<compile_context>
chip_gen: v6e
topology: v6e:2x2x1
jax: 0.10.0
libtpu: 0.0.40
codegen_flags: <defaults>
</compile_context>

<pallas_src>
import functools

import jax
import jax.numpy as jnp
from jax.experimental import pallas as pl
from jax.experimental.pallas import tpu as pltpu


def _mha_kernel(*refs, n_head, has_mask):
    if has_mask:
        (x_ref, wqkv_ref, bqkv_ref, wo_ref, bo_ref, mask_ref,
         out_ref, qk_ref, acc_ref) = refs
    else:
        (x_ref, wqkv_ref, bqkv_ref, wo_ref, bo_ref,
         out_ref, qk_ref, acc_ref) = refs
        mask_ref = None

    h = pl.program_id(1)
    hd = wo_ref.shape[1]                      # head_dim

    @pl.when(h == 0)
    def _():
        acc_ref[...] = jnp.zeros_like(acc_ref)

    x = x_ref[0]                              # (T, D) bf16

    # Fused per-head q/k/v projection: (T, D) @ (D, 3*hd), f32 accumulation.
    qkv = jnp.dot(x, wqkv_ref[0],
                  preferred_element_type=jnp.float32) + bqkv_ref[0]
    qh = qkv[:, :hd].astype(jnp.bfloat16)          # scale already folded in Wq
    kh = qkv[:, hd:2 * hd].astype(jnp.bfloat16)
    vh = qkv[:, 2 * hd:].astype(jnp.bfloat16)

    # Scores: q @ k^T via dot_general (no materialized transpose), f32 accum.
    sc = jax.lax.dot_general(qh, kh, (((1,), (1,)), ((), ())),
                             preferred_element_type=jnp.float32)
    if has_mask:
        sc = sc + mask_ref[...]
    qk_ref[0, 0] = sc                          # pre-softmax scores (float32)

    m = jnp.max(sc, axis=-1, keepdims=True)
    e = jnp.exp(sc - m)
    w = e * pl.reciprocal(jnp.sum(e, axis=-1, keepdims=True), approx=True)

    oh = jnp.dot(w.astype(jnp.bfloat16), vh,
                 preferred_element_type=jnp.float32)          # (T, hd)
    # Accumulate this head's contribution to the output projection.
    acc_ref[...] += jnp.dot(oh.astype(jnp.bfloat16), wo_ref[0],
                            preferred_element_type=jnp.float32)

    @pl.when(h == n_head - 1)
    def _():
        out_ref[0] = (acc_ref[...] + bo_ref[...]).astype(out_ref.dtype)


def multi_head_attention(x, params, n_head, mask=None):
    """Pallas implementation of whisper MultiHeadAttention.forward
    (self-attention, no kv_cache). Returns (out, qk) like the PyTorch module."""
    B, T, D = x.shape
    assert D % n_head == 0
    hd = D // n_head
    scale2 = float(hd) ** (-0.5)   # == (hd**-0.25) applied to both q and k

    wq, bq, wk, wv, bv, wo, bo = (params["wq"], params["bq"], params["wk"],
                                  params["wv"], params["bv"], params["wo"],
                                  params["bo"])

    def per_head(w_t):             # (D, D) pre-transposed -> (H, D, hd)
        return w_t.reshape(D, n_head, hd).transpose(1, 0, 2)

    # Pre-transposed, head-packed QKV weights (scale folded into Wq), bf16.
    w_qkv = jnp.concatenate(
        [per_head((wq * scale2).T), per_head(wk.T), per_head(wv.T)],
        axis=-1).astype(jnp.bfloat16)                            # (H, D, 3*hd)
    b_qkv = jnp.concatenate(
        [(bq * scale2).reshape(n_head, 1, hd),
         jnp.zeros((n_head, 1, hd), jnp.float32),                # key has no bias
         bv.reshape(n_head, 1, hd)],
        axis=-1).astype(jnp.float32)                             # (H, 1, 3*hd)
    w_o = wo.T.reshape(n_head, hd, D).astype(jnp.bfloat16)       # (H, hd, D)
    b_o = bo.reshape(1, D).astype(jnp.float32)

    x_bf = x.astype(jnp.bfloat16)
    has_mask = mask is not None

    in_specs = [
        pl.BlockSpec((1, T, D), lambda b, h: (b, 0, 0)),          # x
        pl.BlockSpec((1, D, 3 * hd), lambda b, h: (h, 0, 0)),     # packed Wqkv^T
        pl.BlockSpec((1, 1, 3 * hd), lambda b, h: (h, 0, 0)),     # packed bias
        pl.BlockSpec((1, hd, D), lambda b, h: (h, 0, 0)),         # Wo^T rows
        pl.BlockSpec((1, D), lambda b, h: (0, 0)),                # bo
    ]
    args = [x_bf, w_qkv, b_qkv, w_o, b_o]
    if has_mask:
        in_specs.append(pl.BlockSpec((T, T), lambda b, h: (0, 0)))
        args.append(mask[:T, :T].astype(jnp.float32))

    kernel = functools.partial(_mha_kernel, n_head=n_head, has_mask=has_mask)

    out, qk = pl.pallas_call(
        kernel,
        out_shape=(
            jax.ShapeDtypeStruct((B, T, D), x.dtype),
            jax.ShapeDtypeStruct((B, n_head, T, T), jnp.float32),
        ),
        grid_spec=pltpu.PrefetchScalarGridSpec(
            num_scalar_prefetch=0,
            grid=(B, n_head),
            in_specs=in_specs,
            out_specs=[
                pl.BlockSpec((1, T, D), lambda b, h: (b, 0, 0)),
                pl.BlockSpec((1, 1, T, T), lambda b, h: (b, h, 0, 0)),
            ],
            scratch_shapes=[pltpu.VMEM((T, D), jnp.float32)],
        ),
        compiler_params=pltpu.CompilerParams(
            dimension_semantics=("parallel", "arbitrary")),
    )(*args)
    return out, qk


def _reference(x, params, n_head, mask):
    """Plain-JAX (f32) replica of the PyTorch forward, for verification."""
    B, T, D = x.shape
    hd = D // n_head
    scale = float(hd) ** (-0.25)
    q = x @ params["wq"].T + params["bq"]
    k = x @ params["wk"].T
    v = x @ params["wv"].T + params["bv"]
    q = q.reshape(B, T, n_head, hd).transpose(0, 2, 1, 3) * scale
    k = k.reshape(B, T, n_head, hd).transpose(0, 2, 3, 1) * scale
    v = v.reshape(B, T, n_head, hd).transpose(0, 2, 1, 3)
    qk = jnp.einsum("bhtd,bhds->bhts", q, k)
    if mask is not None:
        qk = qk + mask[:T, :T]
    qk = qk.astype(jnp.float32)
    w = jax.nn.softmax(qk, axis=-1).astype(x.dtype)
    wv = jnp.einsum("bhts,bhsd->bhtd", w, v).transpose(0, 2, 1, 3).reshape(B, T, D)
    out = wv @ params["wo"].T + params["bo"]
    return out, qk


if __name__ == "__main__":
    B, T, D, H = 2, 8, 32, 4  # batch, n_ctx, n_state, n_head

    key = jax.random.PRNGKey(0)
    keys = jax.random.split(key, 8)
    params = {
        "wq": jax.random.normal(keys[0], (D, D), jnp.float32) * 0.1,
        "bq": jax.random.normal(keys[1], (D,), jnp.float32) * 0.1,
        "wk": jax.random.normal(keys[2], (D, D), jnp.float32) * 0.1,
        "wv": jax.random.normal(keys[3], (D, D), jnp.float32) * 0.1,
        "bv": jax.random.normal(keys[4], (D,), jnp.float32) * 0.1,
        "wo": jax.random.normal(keys[5], (D, D), jnp.float32) * 0.1,
        "bo": jax.random.normal(keys[6], (D,), jnp.float32) * 0.1,
    }
    x = jax.random.normal(keys[7], (B, T, D), jnp.float32)

    # Causal mask (whisper-style upper-triangular, large negative).
    mask = jnp.triu(jnp.full((T, T), -1e9, jnp.float32), k=1)

    out, qk = multi_head_attention(x, params, n_head=H, mask=mask)
    out = jax.block_until_ready(out)
    qk = jax.block_until_ready(qk)

    out_ref, qk_ref = _reference(x, params, H, mask)
    assert out.shape == (B, T, D) and qk.shape == (B, H, T, T)
    # bf16 MXU matmuls (f32 accumulation) vs f32 reference -> relaxed tolerance.
    assert jnp.allclose(qk, qk_ref, atol=5e-2, rtol=5e-2)
    assert jnp.allclose(out, out_ref, atol=5e-2, rtol=5e-2)

    # Also exercise the mask=None fast path (no mask DMA / add).
    out_nm, qk_nm = multi_head_attention(x, params, n_head=H, mask=None)
    out_nm = jax.block_until_ready(out_nm)
    out_ref_nm, qk_ref_nm = _reference(x, params, H, None)
    assert jnp.allclose(qk_nm, qk_ref_nm, atol=5e-2, rtol=5e-2)
    assert jnp.allclose(out_nm, out_ref_nm, atol=5e-2, rtol=5e-2)

    print("KERNEL_OK")
</pallas_src>

<mosaic_0001>
module attributes {stable_mosaic.version = 11 : i64} {
  func.func @_mha_kernel(%arg0: i32, %arg1: i32, %arg2: memref<1x8x32xbf16, #tpu.memory_space<vmem>>, %arg3: memref<1x32x24xbf16, #tpu.memory_space<vmem>>, %arg4: memref<1x1x24xf32, #tpu.memory_space<vmem>>, %arg5: memref<1x8x32xbf16, #tpu.memory_space<vmem>>, %arg6: memref<1x32xf32, #tpu.memory_space<vmem>>, %arg7: memref<8x8xf32, #tpu.memory_space<vmem>>, %arg8: memref<1x8x32xf32, #tpu.memory_space<vmem>>, %arg9: memref<1x1x8x8xf32, #tpu.memory_space<vmem>>, %arg10: memref<8x32xf32, #tpu.memory_space<vmem>>) attributes {dimension_semantics = [#tpu.dimension_semantics<parallel>, #tpu.dimension_semantics<arbitrary>], iteration_bounds = array<i64: 2, 4>, scalar_prefetch = 0 : i64, scratch_operands = 1 : i64, tpu.core_type = #tpu.core_type<tc>, window_params = [{transform_indices = @transform_0, window_bounds = array<i64: 1, 8, 32>}, {transform_indices = @transform_1, window_bounds = array<i64: 1, 32, 24>}, {transform_indices = @transform_2, window_bounds = array<i64: 1, 1, 24>}, {transform_indices = @transform_3, window_bounds = array<i64: 1, 8, 32>}, {pipeline_mode = #tpu.pipeline_mode<synchronous>, transform_indices = @transform_4, window_bounds = array<i64: 1, 32>}, {pipeline_mode = #tpu.pipeline_mode<synchronous>, transform_indices = @transform_5, window_bounds = array<i64: 8, 8>}, {transform_indices = @transform_6, window_bounds = array<i64: 1, 8, 32>}, {transform_indices = @transform_7, window_bounds = array<i64: 1, 1, 8, 8>}]} {
    %c0_i32 = arith.constant 0 : i32
    %0 = arith.cmpi eq, %arg1, %c0_i32 : i32
    %1 = arith.extui %0 : i1 to i32
    %c0_i32_0 = arith.constant 0 : i32
    %2 = arith.cmpi ne, %1, %c0_i32_0 : i32
    scf.if %2 {
      %cst_28 = arith.constant 0.000000e+00 : f32
      %46 = vector.broadcast %cst_28 : f32 to vector<8x32xf32>
      %c0_29 = arith.constant 0 : index
      %c0_30 = arith.constant 0 : index
      %47 = vector.load %arg10[%c0_29, %c0_30] : memref<8x32xf32, #tpu.memory_space<vmem>>, vector<8x32xf32>
      tpu.vector_store %arg10[%c0_29, %c0_30], %46 {strides = array<i32>} : memref<8x32xf32, #tpu.memory_space<vmem>>, vector<8x32xf32>,
    } else {
    }
    %c0 = arith.constant 0 : index
    %c0_1 = arith.constant 0 : index
    %c0_2 = arith.constant 0 : index
    %3 = vector.load %arg2[%c0, %c0_1, %c0_2] : memref<1x8x32xbf16, #tpu.memory_space<vmem>>, vector<1x8x32xbf16>
    %4 = vector.shape_cast %3 : vector<1x8x32xbf16> to vector<8x32xbf16>
    %c0_3 = arith.constant 0 : index
    %c0_4 = arith.constant 0 : index
    %c0_5 = arith.constant 0 : index
    %5 = vector.load %arg3[%c0_3, %c0_4, %c0_5] : memref<1x32x24xbf16, #tpu.memory_space<vmem>>, vector<1x32x24xbf16>
    %6 = vector.shape_cast %5 : vector<1x32x24xbf16> to vector<32x24xbf16>
    %cst = arith.constant dense<0.000000e+00> : vector<8x24xf32>
    %7 = tpu.matmul %4, %6, %cst {dimension_numbers = #tpu.dot_dimension_numbers<[1], [0], [0], [1], [0, 0, 1, 1], [], []>} : vector<8x32xbf16>, vector<32x24xbf16>, vector<8x24xf32> -> vector<8x24xf32>
    %c0_6 = arith.constant 0 : index
    %c0_7 = arith.constant 0 : index
    %c0_8 = arith.constant 0 : index
    %8 = vector.load %arg4[%c0_6, %c0_7, %c0_8] : memref<1x1x24xf32, #tpu.memory_space<vmem>>, vector<1x1x24xf32>
    %9 = vector.shape_cast %8 : vector<1x1x24xf32> to vector<1x24xf32>
    %10 = vector.broadcast %9 : vector<1x24xf32> to vector<8x24xf32>
    %11 = arith.addf %7, %10 : vector<8x24xf32>
    %12 = vector.extract_strided_slice %11 {offsets = [0, 0], sizes = [8, 8], strides = [1, 1]} : vector<8x24xf32> to vector<8x8xf32>
    %13 = arith.truncf %12 : vector<8x8xf32> to vector<8x8xbf16>
    %14 = vector.extract_strided_slice %11 {offsets = [0, 8], sizes = [8, 8], strides = [1, 1]} : vector<8x24xf32> to vector<8x8xf32>
    %15 = arith.truncf %14 : vector<8x8xf32> to vector<8x8xbf16>
    %16 = vector.extract_strided_slice %11 {offsets = [0, 16], sizes = [8, 8], strides = [1, 1]} : vector<8x24xf32> to vector<8x8xf32>
    %17 = arith.truncf %16 : vector<8x8xf32> to vector<8x8xbf16>
    %cst_9 = arith.constant dense<0.000000e+00> : vector<8x8xf32>
    %18 = tpu.matmul %13, %15, %cst_9 {dimension_numbers = #tpu.dot_dimension_numbers<[1], [1], [0], [0], [0, 0, 1, 0], [], []>} : vector<8x8xbf16>, vector<8x8xbf16>, vector<8x8xf32> -> vector<8x8xf32>
    %c0_10 = arith.constant 0 : index
    %c0_11 = arith.constant 0 : index
    %19 = vector.load %arg7[%c0_10, %c0_11] : memref<8x8xf32, #tpu.memory_space<vmem>>, vector<8x8xf32>
    %20 = arith.addf %18, %19 : vector<8x8xf32>
    %c0_12 = arith.constant 0 : index
    %c0_13 = arith.constant 0 : index
    %c0_14 = arith.constant 0 : index
    %c0_15 = arith.constant 0 : index
    %21 = vector.load %arg9[%c0_12, %c0_13, %c0_14, %c0_15] : memref<1x1x8x8xf32, #tpu.memory_space<vmem>>, vector<1x1x8x8xf32>
    %22 = vector.shape_cast %21 : vector<1x1x8x8xf32> to vector<8x8xf32>
    %23 = vector.shape_cast %20 : vector<8x8xf32> to vector<1x1x8x8xf32>
    tpu.vector_store %arg9[%c0_12, %c0_13, %c0_14, %c0_15], %23 {strides = array<i32>} : memref<1x1x8x8xf32, #tpu.memory_space<vmem>>, vector<1x1x8x8xf32>,
    %cst_16 = arith.constant dense<0xFF800000> : vector<8xf32>
    %24 = vector.multi_reduction <maximumf>, %20, %cst_16 [1] : vector<8x8xf32> to vector<8xf32>
    %25 = vector.shape_cast %24 : vector<8xf32> to vector<8x1xf32>
    %26 = vector.broadcast %25 : vector<8x1xf32> to vector<8x8xf32>
    %27 = arith.subf %20, %26 : vector<8x8xf32>
    %28 = math.exp %27 : vector<8x8xf32>
    %cst_17 = arith.constant dense<0.000000e+00> : vector<8xf32>
    %29 = vector.multi_reduction <add>, %28, %cst_17 [1] : vector<8x8xf32> to vector<8xf32>
    %30 = vector.shape_cast %29 : vector<8xf32> to vector<8x1xf32>
    %31 = tpu.reciprocal %30 {approx = true} : vector<8x1xf32> -> vector<8x1xf32>
    %32 = vector.broadcast %31 : vector<8x1xf32> to vector<8x8xf32>
    %33 = arith.mulf %28, %32 : vector<8x8xf32>
    %34 = arith.truncf %33 : vector<8x8xf32> to vector<8x8xbf16>
    %cst_18 = arith.constant dense<0.000000e+00> : vector<8x8xf32>
    %35 = tpu.matmul %34, %17, %cst_18 {dimension_numbers = #tpu.dot_dimension_numbers<[1], [0], [0], [1], [0, 0, 1, 1], [], []>} : vector<8x8xbf16>, vector<8x8xbf16>, vector<8x8xf32> -> vector<8x8xf32>
    %c0_19 = arith.constant 0 : index
    %c0_20 = arith.constant 0 : index
    %36 = vector.load %arg10[%c0_19, %c0_20] : memref<8x32xf32, #tpu.memory_space<vmem>>, vector<8x32xf32>
    %37 = arith.truncf %35 : vector<8x8xf32> to vector<8x8xbf16>
    %c0_21 = arith.constant 0 : index
    %c0_22 = arith.constant 0 : index
    %c0_23 = arith.constant 0 : index
    %38 = vector.load %arg5[%c0_21, %c0_22, %c0_23] : memref<1x8x32xbf16, #tpu.memory_space<vmem>>, vector<1x8x32xbf16>
    %39 = vector.shape_cast %38 : vector<1x8x32xbf16> to vector<8x32xbf16>
    %cst_24 = arith.constant dense<0.000000e+00> : vector<8x32xf32>
    %40 = tpu.matmul %37, %39, %cst_24 {dimension_numbers = #tpu.dot_dimension_numbers<[1], [0], [0], [1], [0, 0, 1, 1], [], []>} : vector<8x8xbf16>, vector<8x32xbf16>, vector<8x32xf32> -> vector<8x32xf32>
    %41 = arith.addf %36, %40 : vector<8x32xf32>
    %c0_25 = arith.constant 0 : index
    %c0_26 = arith.constant 0 : index
    %42 = vector.load %arg10[%c0_25, %c0_26] : memref<8x32xf32, #tpu.memory_space<vmem>>, vector<8x32xf32>
    tpu.vector_store %arg10[%c0_25, %c0_26], %41 {strides = array<i32>} : memref<8x32xf32, #tpu.memory_space<vmem>>, vector<8x32xf32>,
    %c3_i32 = arith.constant 3 : i32
    %43 = arith.cmpi eq, %arg1, %c3_i32 : i32
    %44 = arith.extui %43 : i1 to i32
    %c0_i32_27 = arith.constant 0 : i32
    %45 = arith.cmpi ne, %44, %c0_i32_27 : i32
    scf.if %45 {
      %c0_28 = arith.constant 0 : index
      %c0_29 = arith.constant 0 : index
      %46 = vector.load %arg10[%c0_28, %c0_29] : memref<8x32xf32, #tpu.memory_space<vmem>>, vector<8x32xf32>
      %c0_30 = arith.constant 0 : index
      %c0_31 = arith.constant 0 : index
      %47 = vector.load %arg6[%c0_30, %c0_31] : memref<1x32xf32, #tpu.memory_space<vmem>>, vector<1x32xf32>
      %48 = vector.broadcast %47 : vector<1x32xf32> to vector<8x32xf32>
      %49 = arith.addf %46, %48 : vector<8x32xf32>
      %c0_32 = arith.constant 0 : index
      %c0_33 = arith.constant 0 : index
      %c0_34 = arith.constant 0 : index
      %50 = vector.load %arg8[%c0_32, %c0_33, %c0_34] : memref<1x8x32xf32, #tpu.memory_space<vmem>>, vector<1x8x32xf32>
      %51 = vector.shape_cast %50 : vector<1x8x32xf32> to vector<8x32xf32>
      %52 = vector.shape_cast %49 : vector<8x32xf32> to vector<1x8x32xf32>
      tpu.vector_store %arg8[%c0_32, %c0_33, %c0_34], %52 {strides = array<i32>} : memref<1x8x32xf32, #tpu.memory_space<vmem>>, vector<1x8x32xf32>,
    } else {
    }
    return
  }
  func.func @transform_0(%arg0: i32, %arg1: i32) -> (i32, i32, i32) {
    %c0_i32 = arith.constant 0 : i32
    %c0_i32_0 = arith.constant 0 : i32
    %c0_i32_1 = arith.constant 0 : i32
    return %arg0, %c0_i32, %c0_i32_0 : i32, i32, i32
  }
  func.func @transform_1(%arg0: i32, %arg1: i32) -> (i32, i32, i32) {
    %c0_i32 = arith.constant 0 : i32
    %c0_i32_0 = arith.constant 0 : i32
    %c0_i32_1 = arith.constant 0 : i32
    return %arg1, %c0_i32, %c0_i32_0 : i32, i32, i32
  }
  func.func @transform_2(%arg0: i32, %arg1: i32) -> (i32, i32, i32) {
    %c0_i32 = arith.constant 0 : i32
    %c0_i32_0 = arith.constant 0 : i32
    %c0_i32_1 = arith.constant 0 : i32
    return %arg1, %c0_i32, %c0_i32_0 : i32, i32, i32
  }
  func.func @transform_3(%arg0: i32, %arg1: i32) -> (i32, i32, i32) {
    %c0_i32 = arith.constant 0 : i32
    %c0_i32_0 = arith.constant 0 : i32
    %c0_i32_1 = arith.constant 0 : i32
    return %arg1, %c0_i32, %c0_i32_0 : i32, i32, i32
  }
  func.func @transform_4(%arg0: i32, %arg1: i32) -> (i32, i32) {
    %c0_i32 = arith.constant 0 : i32
    %c0_i32_0 = arith.constant 0 : i32
    %c0_i32_1 = arith.constant 0 : i32
    return %c0_i32, %c0_i32_0 : i32, i32
  }
  func.func @transform_5(%arg0: i32, %arg1: i32) -> (i32, i32) {
    %c0_i32 = arith.constant 0 : i32
    %c0_i32_0 = arith.constant 0 : i32
    %c0_i32_1 = arith.constant 0 : i32
    return %c0_i32, %c0_i32_0 : i32, i32
  }
  func.func @transform_6(%arg0: i32, %arg1: i32) -> (i32, i32, i32) {
    %c0_i32 = arith.constant 0 : i32
    %c0_i32_0 = arith.constant 0 : i32
    %c0_i32_1 = arith.constant 0 : i32
    return %arg0, %c0_i32, %c0_i32_0 : i32, i32, i32
  }
  func.func @transform_7(%arg0: i32, %arg1: i32) -> (i32, i32, i32, i32) {
    %c0_i32 = arith.constant 0 : i32
    %c0_i32_0 = arith.constant 0 : i32
    %c0_i32_1 = arith.constant 0 : i32
    return %arg0, %arg1, %c0_i32, %c0_i32_0 : i32, i32, i32, i32
  }
}

</mosaic_0001>

<bundles_post_ra>
// kernel: tpu_custom_call.1
= control target key start
LH: loop header
LB: loop body
LE: loop exit
PB: predicated region body
PF: predicated region fallthrough
CT: control target
= control target key end

     0   :  { %s1406_s0 = inlined_call_operand.vmem [shape: bf16[2,8,32], index: 0, kind: input, shape index: {}]   ;;  %s1407_s1 = inlined_call_operand.vmem [shape: bf16[4,32,24], index: 1, kind: input, shape index: {}]   ;;  %s1408_s2 = inlined_call_operand.vmem [shape: f32[4,1,24], index: 2, kind: input, shape index: {}]   ;;  %s1409_s3 = inlined_call_operand.vmem [shape: bf16[4,8,32], index: 3, kind: input, shape index: {}]   ;;  %s1410_s4 = inlined_call_operand.vmem [shape: f32[1,32], index: 4, kind: input, shape index: {}]   ;;  %s1411_s5 = inlined_call_operand.vmem [shape: f32[8,8], index: 5, kind: input, shape index: {}]   ;;  %s1412_s6 = inlined_call_operand.hbm [shape: f32[2,8,32], index: 6, kind: output, shape index: {0}]   ;;  %s1413_s7 = inlined_call_operand.hbm [shape: f32[2,4,8,8], index: 7, kind: output, shape index: {1}]  }
   0x1   :  { %1432 = sst [smem:[#allocation24_spill]] %s1413_s7 }
   0x2   :  { %13 = vsyncpa [#allocation4], 0 }
   0x3   :  { %15 = vsyncpa [#allocation4 + $0x1], 0 }
   0x4   :  { %16 = vsyncpa [#allocation6], 0 }
   0x5   :  { %18 = vsyncpa [#allocation6 + $0x1], 0  ;;  %s1145_s24 = smov 0   ;;  %s1147_s25 = smov 0  }
   0x6   :  { %s1149_s26 = smov 0   ;;  %s1151_s27 = smov 0  }
   0x7   :  { %s1153_s28 = smov 0   ;;  %s1155_s29 = smov 0  }
   0x8   :  { %s1157_s30 = smov 0   ;;  %s1159_s8 = smov 0  }
   0x9   :  { %s1161_s9 = smov 0   ;;  %s1163_s10 = smov 0  }
   0xa   :  { %s1165_s11 = smov 0  }
   0xb LB: > { %1433 = sst [smem:[#allocation9_spill]] %s1056_s24  ;;  %s775_s12 = sadd.s32 4294967295, %s1096_s11   ;;  %s1096_s11 = sphi %s1165_s11, %s24_s11   ;;  %s1092_s10 = sphi %s1163_s10, %s1474_s10   ;;  %s1088_s9 = sphi %s1161_s9, %s1473_s9   ;;  %s1084_s8 = sphi %s1159_s8, %s1472_s8   ;;  %s1080_s30 = sphi %s1157_s30, %s1471_s30   ;;  %s1076_s29 = sphi %s1155_s29, %s1470_s29   ;;  %s1072_s28 = sphi %s1153_s28, %s1476_s28   ;;  %s1068_s27 = sphi %s1151_s27, %s1475_s27   ;;  %s1064_s26 = sphi %s1149_s26, %s1468_s26   ;;  %s1060_s25 = sphi %s1147_s25, %s1467_s25   ;;  %s1056_s24 = sphi %s1145_s24, %s1466_s24  }
   0xc   : > { %1434 = sst [smem:[#allocation10_spill]] %s1060_s25  ;;  %s776_s13 = sadd.s32 4294967294, %s1096_s11  }
   0xd   : > { %1435 = sst [smem:[#allocation11_spill]] %s1064_s26  ;;  %s33_s14 = sadd.s32 1, %s1088_s9 }
   0xe   : > { %1436 = sst [smem:[#allocation12_spill]] %s1068_s27  ;;  %s36_s15 = sadd.s32 1, %s1092_s10 }
   0xf   : > { %1437 = sst [smem:[#allocation13_spill]] %s1076_s29  ;;  %p34_p0 = scmp.ge.s32.totalorder %s33_s14, 4 }
  0x10   : > { %1438 = sst [smem:[#allocation14_spill]] %s1088_s9  ;;  %s189_s16 = sadd.s32 1, %s1076_s29 }
  0x11   : > { %1439 = sst [smem:[#allocation15_spill]] %s1092_s10  ;;  %p199_p1 = scmp.ne.s32.totalorder %s1076_s29, %s1072_s28 }
  0x12   : > { %1440 = sst [smem:[#allocation16_spill]] %s1096_s11  ;;  %p1207_p2 = scmp.eq.s32.totalorder %s775_s12, 7 }
  0x13   : > { %s1478_s14 = smov (%p34_p0, %s33_s14), 0  ;;  %s1480_s15 = smov (!%p34_p0, %s36_s15), %s1092_s10 }
  0x14   : > { %1442 = sst [smem:[#allocation17_spill]] %s1478_s14  ;;  %p1216_p3 = por %p1207_p2, %p199_p1 }
  0x15   : > { %p205_p4 = scmp.ne.s32.totalorder %s1072_s28, %s1068_s27  ;;  %p38_p5 = scmp.ge.s32.totalorder %s1480_s15, 2 }
  0x16   : > { %p1222_p6 = scmp.eq.s32.totalorder %s776_s13, 7  ;;  %s213_s20 = ssub.s32 %s1088_s9, %s1478_s14 }
  0x17   : > { %s217_s21 = sadd.s32 1, %s1064_s26  ;;  %s1482_s15 = smov (%p38_p5, %s1480_s15), 0 }
  0x18   : > { %1445 = sst [smem:[#allocation18_spill]] %s1482_s15  ;;  %p1233_p7 = por %p1222_p6, %p205_p4 }
  0x19   : > { %p227_p8 = scmp.ne.s32.totalorder %s1064_s26, %s1060_s25  ;;  %s186_s23 = ssub.s32 %s1092_s10, %s1482_s15 }
  0x1a   : > { %s1446_s22 = scalar_select %p1233_p7, 1, 0 }
  0x1b   : > { %p233_p9 = scmp.ne.s32.totalorder %s1060_s25, %s1056_s24  ;;  %p187_p10 = scmp.eq.s32.totalorder %s186_s23, 0 }
  0x1c   : > { %1447 = sst [smem:[#allocation19_spill]] %s1446_s22  ;;  %s214_s12 = sor.u32 %s213_s20, %s186_s23 }
  0x1d   : > { %p215_p11 = scmp.eq.s32.totalorder %s214_s12, 0  ;;  %p1245_p12 = por %p227_p8, %p1207_p2 }
  0x1e   : > { %s1250_s14 = scalar_select %p187_p10, %s1076_s29, %s189_s16  }
  0x1f   : > { %s1448_s13 = scalar_select %p1245_p12, 1, 0 }
  0x20   : > { %1450 = sst [smem:[#allocation21_spill]] %s1250_s14  ;;  %p1257_p13 = por %p233_p9, %p1222_p6 }
  0x21   : > { %1449 = sst [smem:[#allocation20_spill]] %s1448_s13  ;;  %p779_p0 = scmp.ge.s32.totalorder %s1096_s11, 1 }
  0x22   : > { %s1253_s9 = scalar_select %p215_p11, %s1064_s26, %s217_s21  }
  0x23   : > { %s1452_s27 = scalar_select %p1257_p13, 1, 0 }
  0x24   : > { %1451 = sst [smem:[#allocation22_spill]] %s1253_s9  ;;  %p286_p1 = scmp.lt.s32.totalorder %s1096_s11, 9 }
  0x25   : > { %1453 = sst [smem:[#allocation23_spill]] %s1452_s27 }
  0x26   : > { %p287_p4 = pnand %p779_p0, %p286_p1 }
  0x27   : > { %s1419_s16 = sand.u32 (!%p287_p4), 1, %s1072_s28   ;;  %s1421_s17 = sand.u32 (!%p287_p4), 1, %s1060_s25  }
  0x28   : > { %290 = sbr.rel (%p287_p4) target bundleno = 1345 (0x541), region = 44  ;;  %s1267_s19 = sshll.u32 (!%p287_p4), %s1419_s16, 3 }
  0x29   : > { %s1271_s20 = sshll.u32 (!%p287_p4), %s1421_s17, 3  ;;  %p334_p2 = scmp.lt.s32.totalorder (!%p287_p4), %s1084_s8, 1 }
  0x2a   : > { %p338_p5 = scmp.lt.s32.totalorder (!%p287_p4), %s1080_s30, 3  ;;  %s333_s25 = scalar_lea.vmem (!%p287_p4), [#allocation5], %s1271_s20 }
  0x2b   : > { %p786_p6 = scmp.ne.s32.totalorder (!%p287_p4), %s1080_s30, 0 }
  0x2d   : > { %s335_s21 = scalar_select %p334_p2, %s1084_s8, 1 }
  0x2e   : > { %s1277_s23 = scalar_select %p338_p5, %s1080_s30, 3 }
  0x2f   : > { %s782_s12 = sshll.u32 %s335_s21, 2  ;;  %s326_s21 = scalar_lea.vmem [#allocation3], %s1267_s19 }
  0x30   : > { %s337_s14 = scalar_lea.vmem %s1406_s0, %s782_s12  ;;  %s803_s16 = sshll.u32 %s1277_s23, 4 }
  0x31   : > { %s342_s17 = scalar_lea.vmem %s1407_s1, %s803_s16  ;;  %s345_s24 = scalar_lea.vmem %s1408_s2, %s1277_s23 }
  0x32   : > { %s785_s22 = sshll.u32 %s1277_s23, 2  ;;  %354 = sbr.rel (%p786_p6) target bundleno = 57 (0x39), region = 48 }
  0x33   : > { %s1294_s13 = scalar_lea.vmem %s1409_s3, %s785_s22 }
  0x37   : > { %vm355_vm0 = vcmask 261120   ;;  %v1098_v0 = vmov 0.0  }
  0x38   : > { %356 = vst.msk [vmem:[#allocation2] sm:$0xff] %vm355_vm0, %v1098_v0 }
  0x39 PF: > { %v944_v1 = vld [vmem:[%s342_s17 + $0x8] sm:$0xff]   ;;  %v1099_v2 = vmov 0.0   ;;  %v945_v3 = vld [vmem:[%s342_s17] sm:$0xff]   ;;  %vm1100_vm1 = vmmov 0   ;;  %vm381_vm2 = vcmask 261120   ;;  %s1101_s7 = smov 120  }
  0x3a   : > { %813 = vmatprep.subr.bf16.mxu0 %v1099_v2  ;;  %821 = vmatprep.subr.bf16.mxu1 %v1099_v2  ;;  %v357_v4 = vld [vmem:[%s337_s14] sm:$0xf]  ;;  %vm430_vm3 = vcmask 64512   ;;  %vm495_vm4 = vcmask 1043456   ;;  %s1102_s27 = smov 112   ;;  %p794_p8 = scmp.ne.s32.totalorder %s1080_s30, 3 }
  0x3b   : > { %814 = vmatpush3.bf16.msra.mxu0 %v944_v1  ;;  %817 = vmatprep.mubr.msk.bf16.mxu0 %vm1100_vm1, %v1099_v2  ;;  %v787_v5 = vld [vmem:[%s345_s24] ss:$0 sm:$0xff] }
  0x3c   : > { %815 = vmatprep.subr.bf16.mxu0 %v1099_v2  ;;  %823 = vmatprep.mubr.msk.bf16.mxu1 %vm1100_vm1, %v1099_v2  ;;  %v426_v14 = vld [vmem:[%s1411_s5] sm:$0xff] }
  0x3d   : > { %v541_v26 = vld [vmem:[%s1294_s13] sm:$0xf] }
  0x3e   : > { %v546_v27 = vsel %vm495_vm4, %v541_v26, 0 }
  0x3f   : > { %816 = vmatpush3.bf16.msra.mxu0 %v945_v3  ;;  %v539_v39 = vld [vmem:[#allocation2] sm:$0xff] }
  0x40   : > { %827 = vmatprep.subr.bf16.mxu0 %v1099_v2 }
  0x42   : > { %818 = vmatmul.mubr.msk.bf16.vlgmr.msra.gmra.mxu0 %vm381_vm2, %v357_v4 }
  0x43   : > { %829 = vmatprep.mubr.msk.bf16.mxu0 %vm1100_vm1, %v1099_v2 }
 0x102   : > { %v419_v6 = vpop.f32.mrf.mxu0 }
 0x103   : > { %v420_v7 = vadd.f32 %v787_v5, %v419_v6 }
 0x104   : > { %v819_v8 = vpop.f32.mrf.mxu0 }
 0x105   : > { %v425_v9 = vpack.c.bf16 %v420_v7, %v420_v7 }
 0x106   : > { %v422_v10 = vpop.f32.mrf.mxu0 }
 0x107   : > { %428 = vrot.lane.b32.xlu0 %v425_v9, %s1101_s7 }
 0x108   : > { %v820_v11 = vpop.f32.mrf.mxu0 }
 0x179   : > { %v429_v12 = vpop.permute.xlu0 %428 }
 0x17a   : > { %v435_v13 = vsel %vm430_vm3, %v429_v12, 0 }
 0x17b   : > { %822 = vmatpush3.bf16.xpose.msra.mxu1 %v435_v13 }
 0x17c   : > { %833 = vmatprep.subr.bf16.mxu1 %v1099_v2 }
 0x182   : > { %824 = vmatmul.mubr.msk.bf16.vlgmr.msra.gmra.mxu1 %vm430_vm3, %v425_v9 }
 0x183   : > { %835 = vmatprep.mubr.msk.bf16.mxu1 %vm1100_vm1, %v1099_v2  ;;  %834 = vmatpush3.bf16.msra.mxu1 %v546_v27 }
 0x242   : > { %v471_v15 = vpop.f32.mrf.mxu1 }
 0x243   : > { %v472_v16 = vadd.f32 %v471_v15, %v426_v14 }
 0x244   : > { %v825_v17 = vpop.f32.mrf.mxu1 }
 0x245   : > { %477 = vst.msk [vmem:[%s333_s25] sm:$0xff] %vm430_vm3, %v472_v16  ;;  %v478_v18 = vsel %vm430_vm3, %v472_v16, -inf }
 0x246   : > { %479 = vmax.xlane.f32.xlu0 %v478_v18  ;;  %v474_v19 = vpop.f32.mrf.mxu1 }
 0x248   : > { %v826_v20 = vpop.f32.mrf.mxu1 }
 0x2cf   : > { %v480_v21 = vpop.xlane.xlu0 %479 }
 0x2d0   : > { %v481_v22 = vsub.f32 %v472_v16, %v480_v21 }
 0x2d2   : > { %v482_v23 = vmul.f32 1.442695, %v481_v22 }
 0x2d4   : > { %946 = vpow2.f32 %v482_v23 }
 0x2e1   : > { %v947_v24 = vpop.eup %946 }
 0x2e2   : > { %v484_v25 = vsel %vm430_vm3, %v947_v24, 0.0 }
 0x2e3   : > { %485 = vadd.xlane.f32.xlu1 %v484_v25 }
 0x2f4   : > { %490 = vrot.lane.b32.xlu1 %v425_v9, %s1102_s27 }
 0x36c   : > { %v486_v28 = vpop.xlane.xlu1 %485 }
 0x36d   : > { %948 = vrcp.f32 %v486_v28 }
 0x370   : > { %v491_v29 = vpop.permute.xlu1 %490 }
 0x371   : > { %v497_v30 = vsel %vm495_vm4, %v491_v29, 0 }
 0x372   : > { %828 = vmatpush3.bf16.msra.mxu0 %v497_v30 }
 0x37a   : > { %v949_v31 = vpop.eup %948 }
 0x37b   : > { %v488_v32 = vmul.f32 %v949_v31, %v947_v24 }
 0x37d   : > { %v489_v33 = vpack.c.bf16 %v488_v32, %v488_v32 }
 0x37f   : > { %830 = vmatmul.mubr.msk.bf16.vlgmr.msra.gmra.mxu0 %vm430_vm3, %v489_v33 }
 0x43f   : > { %v533_v34 = vpop.f32.mrf.mxu0 }
 0x440   : > { %v540_v35 = vpack.c.bf16 %v533_v34, %v533_v34 }
 0x441   : > { %v831_v36 = vpop.f32.mrf.mxu0 }
 0x442   : > { %836 = vmatmul.mubr.msk.bf16.vlgmr.msra.gmra.mxu1 %vm430_vm3, %v540_v35 }
 0x443   : > { %v536_v37 = vpop.f32.mrf.mxu0 }
 0x445   : > { %v832_v38 = vpop.f32.mrf.mxu0 }
 0x502   : > { %v582_v40 = vpop.f32.mrf.mxu1 }
 0x503   : > { %v588_v41 = vadd.f32 %v582_v40, %v539_v39 }
 0x504   : > { %v837_v42 = vpop.f32.mrf.mxu1  ;;  %593 = sbr.rel (%p794_p8) target bundleno = 1296 (0x510), region = 52 }
 0x505   : > { %589 = vst.msk [vmem:[#allocation2] sm:$0xff] %vm381_vm2, %v588_v41 }
 0x506   : > { %v585_v43 = vpop.f32.mrf.mxu1 }
 0x508   : > { %v838_v44 = vpop.f32.mrf.mxu1 }
 0x509   : > { %v795_v46 = vld [vmem:[%s1410_s4] ss:$0 sm:$0xff] }
 0x50c   : > { %v594_v45 = vld [vmem:[#allocation2] sm:$0xff] }
 0x50d   : > { %v602_v47 = vadd.f32 %v795_v46, %v594_v45 }
 0x50f   : > { %603 = vst.msk [vmem:[%s326_s21] sm:$0xff] %vm381_vm2, %v602_v47 }
 0x510 PF: > { %s798_s10 = sshll.u32 %s1084_s8, 7  ;;  %s623_s22 = sshll.u32 %s326_s21, 4  ;;  %s624_s22 = int_to_ptr.vmem [resolvable:$true] %s623_s22 }
 0x511   : > { %s621_s15 = scalar_lea.hbm %s1412_s6, %s798_s10  ;;  %s1454_s13 = sand.u32 1, %s1072_s28  }
 0x512   : > { %s605_s16 = scalar_lea.sflag [#allocation4], %s1454_s13  ;;  %s950_s17 = scalar_lea.vmem %s624_s22, 128 }
 0x513   : > { %p951_p9 = scmp.ne.s32.totalorder %s624_s22, %s950_s17  ;;  %s1103_s23 = smov [#allocation3]  }
 0x514   : > { %s954_s12 = sshll.u32 %s1103_s23, 4  ;;  %s955_s12 = int_to_ptr.vmem [resolvable:$false] %s954_s12 }
 0x515   : > { %p952_p10 = pnand %p951_p9, %p1216_p3  ;;  %s956_s7 = scalar_lea.vmem %s955_s12, 256 }
 0x516   : > { %p957_p0 = scmp.lt.s32.totalorder %s624_s22, %s955_s12  ;;  %p958_p1 = scmp.lt.s32.totalorder %s956_s7, %s950_s17 }
 0x517   : > { %p953_p11 = pneg %p952_p10 }
 0x518   : > { %p959_p4 = por %p958_p1, %p957_p0 }
 0x51a   : > { %p960_p2 = pnand %p959_p4, %p953_p11 }
 0x51c   : > { %963 = shalt.err (!%p960_p2)
}
 0x51d   : > { %s964_s24 = scalar_lea.hbm %s621_s15, 128  ;;  %s968_s26 = scalar_lea.hbm %s1412_s6, 256 }
 0x51e   : > { %p965_p5 = scmp.ne.s32.totalorder %s621_s15, %s964_s24  ;;  %p969_p9 = scmp.lt.s32.totalorder %s621_s15, %s1412_s6 }
 0x51f   : > { %p970_p10 = scmp.lt.s32.totalorder %s968_s26, %s964_s24 }
 0x520   : > { %p966_p6 = pnand %p965_p5, %p1216_p3 }
 0x521   : > { %p971_p13 = por %p970_p10, %p969_p9 }
 0x522   : > { %p967_p8 = pneg %p966_p6 }
 0x524   : > { %p972_p7 = pnand %p971_p13, %p967_p8 }
 0x526   : > { %975 = shalt.err (!%p972_p7)
}
 0x527   : > { %s1455_s9 = sld [smem:[#allocation10_spill]]  ;;  %s799_s11 = sshll.u32 %s1084_s8, 2 }
 0x528   : > { %839 = dma.vmem_to_hbm [thread:$0]  (%p1216_p3), %s624_s22, 128, %s621_s15, %s605_s16  }
 0x529   : > { %s638_s14 = sshll.u32 %s333_s25, 4  ;;  %s634_s13 = sadd.s32 %s1080_s30, %s799_s11  ;;  %s639_s14 = int_to_ptr.vmem [resolvable:$true] %s638_s14 }
 0x52a   : > { %s800_s17 = sshll.u32 %s634_s13, 7  ;;  %s1457_s7 = sld [smem:[#allocation24_spill]] }
 0x52b   : > { %s976_s26 = scalar_lea.vmem %s639_s14, 128  ;;  %s1104_s18 = smov [#allocation5]  }
 0x52c   : > { %p977_p7 = scmp.ne.s32.totalorder %s639_s14, %s976_s26  ;;  %s980_s27 = sshll.u32 %s1104_s18, 4  ;;  %s981_s27 = int_to_ptr.vmem [resolvable:$false] %s980_s27 }
 0x52d   : > { %s1458_s19 = sand.u32 1, %s1455_s9   ;;  %s982_s8 = scalar_lea.vmem %s981_s27, 256 }
 0x52e   : > { %s610_s21 = scalar_lea.sflag [#allocation6], %s1458_s19  ;;  %p978_p13 = pnand %p977_p7, %p1245_p12 }
 0x52f   : > { %p983_p3 = scmp.lt.s32.totalorder %s639_s14, %s981_s27  ;;  %p984_p0 = scmp.lt.s32.totalorder %s982_s8, %s976_s26 }
 0x530   : > { %s636_s24 = scalar_lea.hbm %s1457_s7, %s800_s17  ;;  %p979_p11 = pneg %p978_p13 }
 0x531   : > { %p985_p1 = por %p984_p0, %p983_p3 }
 0x533   : > { %p986_p4 = pnand %p985_p1, %p979_p11 }
 0x535   : > { %989 = shalt.err (!%p986_p4)
}
 0x536   : > { %s990_s25 = scalar_lea.hbm %s636_s24, 128  ;;  %s994_s15 = scalar_lea.hbm %s1457_s7, 1024 }
 0x537   : > { %p991_p2 = scmp.ne.s32.totalorder %s636_s24, %s990_s25  ;;  %p995_p8 = scmp.lt.s32.totalorder %s636_s24, %s1457_s7 }
 0x538   : > { %p996_p9 = scmp.lt.s32.totalorder %s994_s15, %s990_s25 }
 0x539   : > { %p992_p5 = pnand %p991_p2, %p1245_p12 }
 0x53a   : > { %p997_p10 = por %p996_p9, %p995_p8 }
 0x53b   : > { %p993_p6 = pneg %p992_p5 }
 0x53d   : > { %p998_p7 = pnand %p997_p10, %p993_p6 }
 0x53f   : > { %1001 = shalt.err (!%p998_p7)
}
 0x540   : > { %840 = dma.vmem_to_hbm [thread:$0]  (%p1245_p12), %s639_s14, 128, %s636_s24, %s610_s21  }
 0x541 PF: > { %s1459_s29 = sld [smem:[#allocation16_spill]] }
 0x542   : > { %s1460_s9 = sld [smem:[#allocation12_spill]] }
 0x543   : > { %s1461_s11 = sld [smem:[#allocation19_spill]] }
 0x547   : > { %p850_p13 = scmp.ge.s32.totalorder %s1459_s29, 2 }
 0x548   : > { %s650_s13 = sand.u32 1, %s1460_s9  }
 0x549   : > { %p1462_p11 = scmp.ne.s32.totalorder %s1461_s11, 0  ;;  %s651_s17 = scalar_lea.sflag [#allocation4], %s650_s13 }
 0x54b   : > { %p844_p3 = pnand %p850_p13, %p1462_p11 }
 0x54d   : > { %p845_p0 = pneg %p844_p3 }
 0x54f   : > { %1047 = dma.done.wait (%p845_p0), %s651_s17, 128  }
 0x550   : > { %1049 = vsyncadd (%p845_p0), %s651_s17, 4294967168  ;;  %s1463_s23 = sld [smem:[#allocation9_spill]] }
 0x551   : > { %s1464_s12 = sld [smem:[#allocation23_spill]] }
 0x556   : > { %s659_s19 = sand.u32 1, %s1463_s23  }
 0x557   : > { %p1465_p1 = scmp.ne.s32.totalorder %s1464_s12, 0  ;;  %s660_s10 = scalar_lea.sflag [#allocation6], %s659_s19 }
 0x559   : > { %p847_p4 = pnand %p850_p13, %p1465_p1 }
 0x55b   : > { %p848_p2 = pneg %p847_p4 }
 0x55d   : > { %1051 = dma.done.wait (%p848_p2), %s660_s10, 128  }
 0x55e   : > { %1053 = vsyncadd (%p848_p2), %s660_s10, 4294967168  ;;  %s24_s11 = sadd.s32 1, %s1459_s29   ;;  %s1466_s24 = sld [smem:[#allocation10_spill]] }
 0x55f   : > { %p21_p12 = scmp.ge.s32.totalorder %s24_s11, 10   ;;  %s1467_s25 = sld [smem:[#allocation11_spill]] }
 0x560   : > { %s1468_s26 = sld [smem:[#allocation22_spill]]  ;;  %s1475_s27 = smov %s1072_s28 }
 0x561   : > { %s1469_s14 = sld [smem:[#allocation13_spill]] }
 0x562   : > { %s1470_s29 = sld [smem:[#allocation21_spill]] }
 0x563   : > { %s1471_s30 = sld [smem:[#allocation14_spill]]  ;;  %23 = sbr.rel (!%p21_p12) target bundleno = 11 (0xb), region = 113 }
 0x564   : > { %s1472_s8 = sld [smem:[#allocation15_spill]] }
 0x565   : > { %s1473_s9 = sld [smem:[#allocation17_spill]] }
 0x566   : > { %s1474_s10 = sld [smem:[#allocation18_spill]] }
 0x567   : > { %s1476_s28 = smov %s1469_s14 }
 0x568   :  { %665 = vsyncpa [#allocation4], 1 }
 0x569   :  { %667 = vsyncpa [#allocation4 + $0x1], 1 }
 0x56a   :  { %668 = vsyncpa [#allocation6], 1 }
 0x56b   :  { %670 = vsyncpa [#allocation6 + $0x1], 1 }

</bundles_post_ra>
